<compile_context>
chip_gen: v6e
topology: v6e:2x2x1
jax: 0.10.0
libtpu: 0.0.40
codegen_flags: <defaults>
</compile_context>

<pallas_src>
import jax
import jax.numpy as jnp
from jax.experimental import pallas as pl
from jax.experimental.pallas import tpu as pltpu


def _fused_mm_add_kernel(p_ref, o_ref):
    """p_ref: (12, 3) packed rows [y1(3); y2(3); x2(3); x3(3)] -> o_ref (3, 3).

    Computes y_cat @ x_cat with y_cat = [y1 | y2] (3x6), x_cat = [x2; x3] (6x3)
    as a sum of 6 rank-1 outer products on the VPU (no MXU).
    """
    p = p_ref[...]                                   # (12, 3) f32, one VMEM tile
    acc = jnp.zeros((3, 3), dtype=jnp.float32)
    for k in range(6):                               # static unroll at trace time
        blk, col = divmod(k, 3)                      # which of y1/y2, which column
        y_col = p[3 * blk:3 * blk + 3, col:col + 1]  # (3, 1) -> lane broadcast
        x_row = p[6 + k:7 + k, :]                    # (1, 3) -> sublane broadcast
        acc = acc + y_col * x_row                    # VPU FMA on a (3, 3) tile
    o_ref[...] = acc


def fused_mm_add(packed):
    """packed: (12, 3) f32 = rows [y1; y2; x2; x3].  Returns y1@x2 + y2@x3."""
    assert packed.shape == (12, 3)
    full = lambda shape: pl.BlockSpec(shape, lambda: (0, 0),
                                      memory_space=pltpu.VMEM)
    return pl.pallas_call(
        _fused_mm_add_kernel,
        out_shape=jax.ShapeDtypeStruct((3, 3), jnp.float32),
        in_specs=[full((12, 3))],
        out_specs=full((3, 3)),
        # 2*M*K*N = 2*3*6*3 flops; bytes = 12*3*4 in + 3*3*4 out.
        cost_estimate=pl.CostEstimate(flops=108, transcendentals=0,
                                      bytes_accessed=180),
    )(packed)


class Model:
    """JAX/Pallas equivalent of the PyTorch Model."""

    def __init__(self, key):
        k1, k2 = jax.random.split(key)
        # Deterministic stand-ins for the module-level torch.randn(3, 3) params.
        self.y1 = jax.random.normal(k1, (3, 3), dtype=jnp.float32)
        self.y2 = jax.random.normal(k2, (3, 3), dtype=jnp.float32)
        # Fixed parameter block precomputed once (fusion concat is free at call time).
        self._y12 = jnp.concatenate([self.y1, self.y2], axis=0)   # (6, 3)

    def __call__(self, x1, x2, x3):
        # x1 is unused in the original forward; it is dropped here and never
        # threaded to the device path.
        packed = jnp.concatenate([self._y12, x2, x3], axis=0)     # (12, 3): one DMA
        return fused_mm_add(packed)


if __name__ == "__main__":
    key = jax.random.PRNGKey(0)
    k_model, k1, k2, k3 = jax.random.split(key, 4)

    model = Model(k_model)

    x1 = jax.random.normal(k1, (3, 3), dtype=jnp.float32)  # unused by forward
    x2 = jax.random.normal(k2, (3, 3), dtype=jnp.float32)
    x3 = jax.random.normal(k3, (3, 3), dtype=jnp.float32)

    out = model(x1, x2, x3)
    jax.block_until_ready(out)

    # Reference check in plain JAX.
    ref = model.y1 @ x2 + model.y2 @ x3
    assert out.shape == (3, 3)
    assert jnp.allclose(out, ref, atol=1e-5, rtol=1e-5)

    print("KERNEL_OK")
</pallas_src>

<mosaic_0001>
module attributes {stable_mosaic.version = 11 : i64} {
  func.func @_fused_mm_add_kernel(%arg0: memref<12x3xf32, #tpu.memory_space<vmem>>, %arg1: memref<3x3xf32, #tpu.memory_space<vmem>>) attributes {dimension_semantics = [], scalar_prefetch = 0 : i64, scratch_operands = 0 : i64, tpu.core_type = #tpu.core_type<tc>} {
    %c0 = arith.constant 0 : index
    %c0_0 = arith.constant 0 : index
    %0 = vector.load %arg0[%c0, %c0_0] : memref<12x3xf32, #tpu.memory_space<vmem>>, vector<12x3xf32>
    %cst = arith.constant 0.000000e+00 : f32
    %1 = vector.broadcast %cst : f32 to vector<3x3xf32>
    %2 = vector.extract_strided_slice %0 {offsets = [0, 0], sizes = [3, 1], strides = [1, 1]} : vector<12x3xf32> to vector<3x1xf32>
    %3 = vector.extract_strided_slice %0 {offsets = [6, 0], sizes = [1, 3], strides = [1, 1]} : vector<12x3xf32> to vector<1x3xf32>
    %4 = vector.broadcast %2 : vector<3x1xf32> to vector<3x3xf32>
    %5 = vector.broadcast %3 : vector<1x3xf32> to vector<3x3xf32>
    %6 = arith.mulf %4, %5 : vector<3x3xf32>
    %7 = arith.addf %1, %6 : vector<3x3xf32>
    %8 = vector.extract_strided_slice %0 {offsets = [0, 1], sizes = [3, 1], strides = [1, 1]} : vector<12x3xf32> to vector<3x1xf32>
    %9 = vector.extract_strided_slice %0 {offsets = [7, 0], sizes = [1, 3], strides = [1, 1]} : vector<12x3xf32> to vector<1x3xf32>
    %10 = vector.broadcast %8 : vector<3x1xf32> to vector<3x3xf32>
    %11 = vector.broadcast %9 : vector<1x3xf32> to vector<3x3xf32>
    %12 = arith.mulf %10, %11 : vector<3x3xf32>
    %13 = arith.addf %7, %12 : vector<3x3xf32>
    %14 = vector.extract_strided_slice %0 {offsets = [0, 2], sizes = [3, 1], strides = [1, 1]} : vector<12x3xf32> to vector<3x1xf32>
    %15 = vector.extract_strided_slice %0 {offsets = [8, 0], sizes = [1, 3], strides = [1, 1]} : vector<12x3xf32> to vector<1x3xf32>
    %16 = vector.broadcast %14 : vector<3x1xf32> to vector<3x3xf32>
    %17 = vector.broadcast %15 : vector<1x3xf32> to vector<3x3xf32>
    %18 = arith.mulf %16, %17 : vector<3x3xf32>
    %19 = arith.addf %13, %18 : vector<3x3xf32>
    %20 = vector.extract_strided_slice %0 {offsets = [3, 0], sizes = [3, 1], strides = [1, 1]} : vector<12x3xf32> to vector<3x1xf32>
    %21 = vector.extract_strided_slice %0 {offsets = [9, 0], sizes = [1, 3], strides = [1, 1]} : vector<12x3xf32> to vector<1x3xf32>
    %22 = vector.broadcast %20 : vector<3x1xf32> to vector<3x3xf32>
    %23 = vector.broadcast %21 : vector<1x3xf32> to vector<3x3xf32>
    %24 = arith.mulf %22, %23 : vector<3x3xf32>
    %25 = arith.addf %19, %24 : vector<3x3xf32>
    %26 = vector.extract_strided_slice %0 {offsets = [3, 1], sizes = [3, 1], strides = [1, 1]} : vector<12x3xf32> to vector<3x1xf32>
    %27 = vector.extract_strided_slice %0 {offsets = [10, 0], sizes = [1, 3], strides = [1, 1]} : vector<12x3xf32> to vector<1x3xf32>
    %28 = vector.broadcast %26 : vector<3x1xf32> to vector<3x3xf32>
    %29 = vector.broadcast %27 : vector<1x3xf32> to vector<3x3xf32>
    %30 = arith.mulf %28, %29 : vector<3x3xf32>
    %31 = arith.addf %25, %30 : vector<3x3xf32>
    %32 = vector.extract_strided_slice %0 {offsets = [3, 2], sizes = [3, 1], strides = [1, 1]} : vector<12x3xf32> to vector<3x1xf32>
    %33 = vector.extract_strided_slice %0 {offsets = [11, 0], sizes = [1, 3], strides = [1, 1]} : vector<12x3xf32> to vector<1x3xf32>
    %34 = vector.broadcast %32 : vector<3x1xf32> to vector<3x3xf32>
    %35 = vector.broadcast %33 : vector<1x3xf32> to vector<3x3xf32>
    %36 = arith.mulf %34, %35 : vector<3x3xf32>
    %37 = arith.addf %31, %36 : vector<3x3xf32>
    %c0_1 = arith.constant 0 : index
    %c0_2 = arith.constant 0 : index
    %38 = vector.load %arg1[%c0_1, %c0_2] : memref<3x3xf32, #tpu.memory_space<vmem>>, vector<3x3xf32>
    tpu.vector_store %arg1[%c0_1, %c0_2], %37 {strides = array<i32>} : memref<3x3xf32, #tpu.memory_space<vmem>>, vector<3x3xf32>,
    return
  }
}

</mosaic_0001>

<bundles_post_ra>
// kernel: tpu_custom_call.1
= control target key start
LH: loop header
LB: loop body
LE: loop exit
PB: predicated region body
PF: predicated region fallthrough
CT: control target
= control target key end

     0   :  { %v115_v1 = vmov 0   ;;  %v116_v2 = vmov 2   ;;  %s138_s0 = inlined_call_operand.vmem [shape: f32[12,3], index: 0, kind: input, shape index: {}]   ;;  %s139_s1 = inlined_call_operand.hbm [shape: f32[3,3], index: 1, kind: output, shape index: {}]  }
   0x1   :  { %v9_v0 = vld [vmem:[%s138_s0] sm:$0xff]  ;;  %89 = vset.pattern.permute.xlu0 %v115_v1  ;;  %91 = vset.pattern.permute.xlu1 %v116_v2 }
   0x2   :  { %6 = vsyncpa [#allocation3], 0  ;;  %13 = vperm.xlu0 %89, %v9_v0   ;;  %33 = vperm.xlu1 %91, %v9_v0   ;;  %v117_v3 = vmov 1   ;;  %v16_v4 = vlaneseq  ;;  %v10_v10 = vld [vmem:[%s138_s0 + $0x8] sm:$0xf]  ;;  %s118_s0 = smov [#allocation2]  }
   0x3   :  { %s77_s10 = sshll.u32 %s118_s0, 4  ;;  %vm69_vm0 = vcmask 18432   ;;  %s78_s10 = int_to_ptr.vmem [resolvable:$true] %s77_s10 }
   0x4   :  { %v17_v5 = vshrl.u32 %v16_v4, 7  ;;  %s93_s11 = scalar_lea.vmem %s78_s10, 64  ;;  %p98_p1 = scmp.lt.s32.totalorder %s78_s10, %s78_s10 }
   0x5   :  { %p94_p0 = scmp.ne.s32.totalorder %s78_s10, %s93_s11  ;;  %p99_p2 = scmp.lt.s32.totalorder %s93_s11, %s93_s11 }
   0x6   :  { %90 = vset.pattern.permute.xlu0 %v117_v3  ;;  %v18_v6 = vsub.s32 6, %v17_v5  ;;  %v44_v7 = vsub.s32 1, %v17_v5  ;;  %v28_v8 = vsub.s32 7, %v17_v5  ;;  %v38_v9 = vsub.s32 0, %v17_v5 }
   0x7   :  { %23 = vperm.xlu0 %90, %v9_v0   ;;  %v53_v12 = vsub.s32 2, %v17_v5  ;;  %v62_v13 = vsub.s32 3, %v17_v5  ;;  %p100_p3 = por %p99_p2, %p98_p1 }
   0x8   :  { %v45_v14 = vrot.slane %v10_v10, %v44_v7  ;;  %v19_v15 = vrot.slane %v9_v0, %v18_v6  ;;  %v29_v16 = vrot.slane %v9_v0, %v28_v8  ;;  %v39_v17 = vrot.slane %v10_v10, %v38_v9 }
   0x9   :  { %v54_v19 = vrot.slane %v10_v10, %v53_v12  ;;  %v63_v21 = vrot.slane %v10_v10, %v62_v13  ;;  %p101_p4 = pnand %p100_p3, %p94_p0 }
   0xb   :  { %92 = vset.pattern.permute.xlu0 %v116_v2 }
  0x7d   :  { %v14_v11 = vpop.permute.xlu0 %13  ;;  %v34_v18 = vpop.permute.xlu1 %33 }
  0x7e   :  { %v20_v22 = vmul.f32 %v19_v15, %v14_v11  ;;  %v46_v23 = vmul.f32 %v45_v14, %v14_v11  ;;  %v40_v25 = vmul.f32 %v39_v17, %v34_v18  ;;  %v64_v30 = vmul.f32 %v63_v21, %v34_v18 }
  0x80   :  { %v48_v28 = vrot.slane %v46_v23, 3  ;;  %v66_v34 = vrot.slane %v64_v30, 3 }
  0x82   :  { %v24_v20 = vpop.permute.xlu0 %23 }
  0x83   :  { %v30_v24 = vmul.f32 %v29_v16, %v24_v20  ;;  %v55_v27 = vmul.f32 %v54_v19, %v24_v20 }
  0x85   :  { %v31_v26 = vadd.f32 %v30_v24, %v20_v22  ;;  %v57_v31 = vrot.slane %v55_v27, 3 }
  0x87   :  { %v41_v29 = vadd.f32 %v40_v25, %v31_v26 }
  0x89   :  { %v50_v32 = vadd.f32 %v48_v28, %v41_v29 }
  0x8b   :  { %v59_v33 = vadd.f32 %v57_v31, %v50_v32 }
  0x8d   :  { %v68_v35 = vadd.f32 %v66_v34, %v59_v33 }
  0x8f   :  { %70 = vst.msk [vmem:[#allocation2] sm:$0x7] %vm69_vm0, %v68_v35 }
  0x90   :  { %104 = shalt.err (!%p101_p4)
}
  0x91   :  { %80 = dma.vmem_to_hbm [thread:$0]  %s78_s10, 64, %s139_s1, [#allocation3]  }
  0x92   :  { %113 = dma.done.wait [#allocation3], 64  }
  0x93   :  { %114 = vsyncadd [#allocation3], 4294967232 }
  0x94   :  { %84 = vsyncpa [#allocation3], 1 }

</bundles_post_ra>
